<compile_context>
chip_gen: v5e
topology: v5e:2x2
jax: 0.10.0
libtpu: 0.0.40
codegen_flags: <defaults>
</compile_context>

<pallas_src>
import jax
import jax.numpy as jnp
from jax import lax
from jax.experimental import pallas as pl
from jax.experimental.pallas import tpu as pltpu


def _encode(code_in_ref, nl_in_ref, w_code_ref, w_text_ref):
    # Two separate MXU matmuls (native 128-wide shape on v5e; no wasted
    # off-diagonal FLOPs, no concat copies).
    # TODO(synk): once the real encoder dims land, cast matmul operands to
    # bfloat16 (keep preferred_element_type=f32) for v6e/v7x MXU peak.
    code_vec = jnp.dot(code_in_ref[...], w_code_ref[...],
                       preferred_element_type=jnp.float32)
    nl_vec = jnp.dot(nl_in_ref[...], w_text_ref[...],
                     preferred_element_type=jnp.float32)
    return code_vec, nl_vec


def _encode_kernel(code_in_ref, nl_in_ref, w_code_ref, w_text_ref,
                   code_vec_ref, nl_vec_ref):
    # return_vec=True path: encoders only, no loss math at all.
    code_vec, nl_vec = _encode(code_in_ref, nl_in_ref, w_code_ref, w_text_ref)
    code_vec_ref[...] = code_vec
    nl_vec_ref[...] = nl_vec


def _loss_kernel(code_in_ref, nl_in_ref, w_code_ref, w_text_ref,
                 code_vec_ref, nl_vec_ref, loss_ref):
    bs = code_in_ref.shape[0]
    code_vec, nl_vec = _encode(code_in_ref, nl_in_ref, w_code_ref, w_text_ref)
    code_vec_ref[...] = code_vec
    nl_vec_ref[...] = nl_vec

    # scores[i,j] = <nl_vec[i], code_vec[j]>: contract on dim 1 of both
    # operands so Mosaic lowers it transpose-free (no XLU vxpose / extra
    # VMEM round-trip).
    scores = lax.dot_general(
        nl_vec, code_vec,
        dimension_numbers=(((1,), (1,)), ((), ())),
        preferred_element_type=jnp.float32)                     # (bs, bs)

    # Diagonal (labels = arange(bs)) computed directly from the vectors:
    # cheaper than iota masks + select + reduce on the (bs, bs) tile.
    diag = jnp.sum(nl_vec * code_vec, axis=-1, keepdims=True)   # (bs, 1)

    # CrossEntropyLoss(scores, arange(bs)), reduction='mean'; all math kept
    # 2-D to stay in the native (sublane, lane) vreg layout.
    m = jnp.max(scores, axis=-1, keepdims=True)                 # (bs, 1)
    lse = m + jnp.log(jnp.sum(jnp.exp(scores - m),
                              axis=-1, keepdims=True))          # (bs, 1)
    loss_ref[0, 0] = jnp.sum(lse - diag) * (1.0 / bs)

    # TODO(synk): for bs in the thousands the (bs,bs) f32 scores tile blows
    # VMEM (64 MiB of scores at bs=4096 on v7x); switch to a gridded
    # online-softmax — "parallel" query tiles, "arbitrary" streamed candidate
    # tiles, (m,l,acc) VMEM scratch, SMEM loss accumulator finalized under
    # @pl.when(last), plus pltpu.CompilerParams(vmem_limit_bytes=...).


def model_forward(code_inputs, nl_inputs, w_code, w_text, return_vec=False):
    bs, k = code_inputs.shape
    d = w_code.shape[1]

    # Zero-pad the contraction dim K to a multiple of 128 so the MXU gets
    # full-depth passes and loads are unmasked (zeros leave the dot exact).
    k_pad = (-k) % 128
    if k_pad:
        code_inputs = jnp.pad(code_inputs, ((0, 0), (0, k_pad)))
        nl_inputs = jnp.pad(nl_inputs, ((0, 0), (0, k_pad)))
        w_code = jnp.pad(w_code, ((0, k_pad), (0, 0)))
        w_text = jnp.pad(w_text, ((0, k_pad), (0, 0)))

    vmem = pl.BlockSpec(memory_space=pltpu.MemorySpace.VMEM)
    smem = pl.BlockSpec(memory_space=pltpu.MemorySpace.SMEM)
    in_specs = [vmem, vmem, vmem, vmem]

    if return_vec:
        # Dedicated vec-only kernel: skips the (bs,bs) matmul, the exp/log,
        # the reductions and the scalar store entirely.
        code_vec, nl_vec = pl.pallas_call(
            _encode_kernel,
            out_shape=[
                jax.ShapeDtypeStruct((bs, d), jnp.float32),   # code_vec
                jax.ShapeDtypeStruct((bs, d), jnp.float32),   # nl_vec
            ],
            in_specs=in_specs,
            out_specs=[vmem, vmem],
        )(code_inputs, nl_inputs, w_code, w_text)
        return code_vec, nl_vec

    code_vec, nl_vec, loss = pl.pallas_call(
        _loss_kernel,
        out_shape=[
            jax.ShapeDtypeStruct((bs, d), jnp.float32),       # code_vec
            jax.ShapeDtypeStruct((bs, d), jnp.float32),       # nl_vec
            jax.ShapeDtypeStruct((1, 1), jnp.float32),        # loss (scalar)
        ],
        in_specs=in_specs,
        out_specs=[vmem, vmem, smem],
    )(code_inputs, nl_inputs, w_code, w_text)
    return loss[0, 0], code_vec, nl_vec


def _reference(code_inputs, nl_inputs, w_code, w_text):
    code_vec = code_inputs @ w_code
    nl_vec = nl_inputs @ w_text
    scores = (nl_vec[:, None, :] * code_vec[None, :, :]).sum(-1)
    labels = jnp.arange(scores.shape[0])
    logp = jax.nn.log_softmax(scores, axis=-1)
    loss = -jnp.mean(logp[jnp.arange(scores.shape[0]), labels])
    return loss, code_vec, nl_vec


if __name__ == "__main__":
    bs = 8          # batch size (in-batch negatives -> scores is bs x bs)
    in_dim = 32     # raw "token feature" dim fed to the synthetic encoders
    d = 128         # shared embedding dim (lane-aligned)

    key = jax.random.PRNGKey(0)
    k1, k2, k3, k4 = jax.random.split(key, 4)
    code_inputs = jax.random.normal(k1, (bs, in_dim), dtype=jnp.float32)
    nl_inputs = jax.random.normal(k2, (bs, in_dim), dtype=jnp.float32)
    # TODO(synk): real text/code transformer encoders are external modules;
    # they are modelled here as linear projections onto the shared space.
    w_code = jax.random.normal(k3, (in_dim, d), dtype=jnp.float32) * 0.05
    w_text = jax.random.normal(k4, (in_dim, d), dtype=jnp.float32) * 0.05

    loss, code_vec, nl_vec = model_forward(code_inputs, nl_inputs,
                                           w_code, w_text)
    jax.block_until_ready((loss, code_vec, nl_vec))

    # return_vec=True path (mirrors the module's early return) — vec-only kernel
    cv2, nv2 = model_forward(code_inputs, nl_inputs, w_code, w_text,
                             return_vec=True)
    jax.block_until_ready((cv2, nv2))

    ref_loss, ref_code, ref_nl = _reference(code_inputs, nl_inputs,
                                            w_code, w_text)
    assert jnp.allclose(code_vec, ref_code, atol=1e-4, rtol=1e-4)
    assert jnp.allclose(nl_vec, ref_nl, atol=1e-4, rtol=1e-4)
    assert jnp.allclose(cv2, ref_code, atol=1e-4, rtol=1e-4)
    assert jnp.allclose(nv2, ref_nl, atol=1e-4, rtol=1e-4)
    assert jnp.allclose(loss, ref_loss, atol=1e-4, rtol=1e-4)

    print("KERNEL_OK")
</pallas_src>

<mosaic_0001>
module attributes {stable_mosaic.version = 11 : i64} {
  func.func @_loss_kernel(%arg0: memref<8x128xf32, #tpu.memory_space<vmem>>, %arg1: memref<8x128xf32, #tpu.memory_space<vmem>>, %arg2: memref<128x128xf32, #tpu.memory_space<vmem>>, %arg3: memref<128x128xf32, #tpu.memory_space<vmem>>, %arg4: memref<8x128xf32, #tpu.memory_space<vmem>>, %arg5: memref<8x128xf32, #tpu.memory_space<vmem>>, %arg6: memref<1x1xf32, #tpu.memory_space<smem>>) attributes {dimension_semantics = [], scalar_prefetch = 0 : i64, scratch_operands = 0 : i64, tpu.core_type = #tpu.core_type<tc>} {
    %c0 = arith.constant 0 : index
    %c0_0 = arith.constant 0 : index
    %0 = vector.load %arg0[%c0, %c0_0] : memref<8x128xf32, #tpu.memory_space<vmem>>, vector<8x128xf32>
    %c0_1 = arith.constant 0 : index
    %c0_2 = arith.constant 0 : index
    %1 = vector.load %arg2[%c0_1, %c0_2] : memref<128x128xf32, #tpu.memory_space<vmem>>, vector<128x128xf32>
    %cst = arith.constant dense<0.000000e+00> : vector<8x128xf32>
    %2 = tpu.matmul %0, %1, %cst {dimension_numbers = #tpu.dot_dimension_numbers<[1], [0], [0], [1], [0, 0, 1, 1], [], []>} : vector<8x128xf32>, vector<128x128xf32>, vector<8x128xf32> -> vector<8x128xf32>
    %c0_3 = arith.constant 0 : index
    %c0_4 = arith.constant 0 : index
    %3 = vector.load %arg1[%c0_3, %c0_4] : memref<8x128xf32, #tpu.memory_space<vmem>>, vector<8x128xf32>
    %c0_5 = arith.constant 0 : index
    %c0_6 = arith.constant 0 : index
    %4 = vector.load %arg3[%c0_5, %c0_6] : memref<128x128xf32, #tpu.memory_space<vmem>>, vector<128x128xf32>
    %cst_7 = arith.constant dense<0.000000e+00> : vector<8x128xf32>
    %5 = tpu.matmul %3, %4, %cst_7 {dimension_numbers = #tpu.dot_dimension_numbers<[1], [0], [0], [1], [0, 0, 1, 1], [], []>} : vector<8x128xf32>, vector<128x128xf32>, vector<8x128xf32> -> vector<8x128xf32>
    %c0_8 = arith.constant 0 : index
    %c0_9 = arith.constant 0 : index
    %6 = vector.load %arg4[%c0_8, %c0_9] : memref<8x128xf32, #tpu.memory_space<vmem>>, vector<8x128xf32>
    tpu.vector_store %arg4[%c0_8, %c0_9], %2 {strides = array<i32>} : memref<8x128xf32, #tpu.memory_space<vmem>>, vector<8x128xf32>,
    %c0_10 = arith.constant 0 : index
    %c0_11 = arith.constant 0 : index
    %7 = vector.load %arg5[%c0_10, %c0_11] : memref<8x128xf32, #tpu.memory_space<vmem>>, vector<8x128xf32>
    tpu.vector_store %arg5[%c0_10, %c0_11], %5 {strides = array<i32>} : memref<8x128xf32, #tpu.memory_space<vmem>>, vector<8x128xf32>,
    %cst_12 = arith.constant dense<0.000000e+00> : vector<8x8xf32>
    %8 = tpu.matmul %5, %2, %cst_12 {dimension_numbers = #tpu.dot_dimension_numbers<[1], [1], [0], [0], [0, 0, 1, 0], [], []>} : vector<8x128xf32>, vector<8x128xf32>, vector<8x8xf32> -> vector<8x8xf32>
    %9 = arith.mulf %5, %2 : vector<8x128xf32>
    %cst_13 = arith.constant dense<0.000000e+00> : vector<8xf32>
    %10 = vector.multi_reduction <add>, %9, %cst_13 [1] : vector<8x128xf32> to vector<8xf32>
    %11 = vector.shape_cast %10 : vector<8xf32> to vector<8x1xf32>
    %cst_14 = arith.constant dense<0xFF800000> : vector<8xf32>
    %12 = vector.multi_reduction <maximumf>, %8, %cst_14 [1] : vector<8x8xf32> to vector<8xf32>
    %13 = vector.shape_cast %12 : vector<8xf32> to vector<8x1xf32>
    %14 = vector.broadcast %13 : vector<8x1xf32> to vector<8x8xf32>
    %15 = arith.subf %8, %14 : vector<8x8xf32>
    %16 = math.exp %15 : vector<8x8xf32>
    %cst_15 = arith.constant dense<0.000000e+00> : vector<8xf32>
    %17 = vector.multi_reduction <add>, %16, %cst_15 [1] : vector<8x8xf32> to vector<8xf32>
    %18 = vector.shape_cast %17 : vector<8xf32> to vector<8x1xf32>
    %19 = math.log %18 : vector<8x1xf32>
    %20 = arith.addf %13, %19 : vector<8x1xf32>
    %21 = arith.subf %20, %11 : vector<8x1xf32>
    %22 = vector.shape_cast %21 : vector<8x1xf32> to vector<1x8x1xf32>
    %cst_16 = arith.constant dense<0.000000e+00> : vector<1xf32>
    %23 = vector.multi_reduction <add>, %22, %cst_16 [1, 2] : vector<1x8x1xf32> to vector<1xf32>
    %24 = vector.shape_cast %23 : vector<1xf32> to vector<1x1x1xf32>
    %25 = vector.extract %24[0, 0, 0] : f32 from vector<1x1x1xf32>
    %cst_17 = arith.constant 1.250000e-01 : f32
    %26 = arith.mulf %25, %cst_17 : f32
    %c0_18 = arith.constant 0 : index
    %c0_19 = arith.constant 0 : index
    %27 = memref.load %arg6[%c0_18, %c0_19] : memref<1x1xf32, #tpu.memory_space<smem>>
    memref.store %26, %arg6[%c0_18, %c0_19] : memref<1x1xf32, #tpu.memory_space<smem>>
    return
  }
}

</mosaic_0001>

<bundles_post_ra>
// kernel: tpu_custom_call.1
= control target key start
LH: loop header
LB: loop body
LE: loop exit
PB: predicated region body
PF: predicated region fallthrough
CT: control target
= control target key end

     0   :  { %12 = vsyncpa [#allocation3], 0  ;;  %s507_s0 = inlined_call_operand.hbm [shape: f32[8,128], index: 0, kind: input, shape index: {}]   ;;  %s508_s1 = inlined_call_operand.hbm [shape: f32[8,128], index: 1, kind: input, shape index: {}]   ;;  %s509_s2 = inlined_call_operand.hbm [shape: f32[128,128], index: 2, kind: input, shape index: {}]   ;;  %s510_s3 = inlined_call_operand.hbm [shape: f32[128,128], index: 3, kind: input, shape index: {}]   ;;  %s511_s4 = inlined_call_operand.hbm [shape: f32[8,128], index: 4, kind: output, shape index: {0}]   ;;  %s512_s5 = inlined_call_operand.hbm [shape: f32[8,128], index: 5, kind: output, shape index: {1}]   ;;  %s513_s6 = inlined_call_operand.hbm [shape: f32[1,1], index: 6, kind: output, shape index: {2}]  }
   0x1   :  { %13 = vsyncpa [#allocation7], 0 }
   0x2   :  { %14 = vsyncpa [#allocation10], 0 }
   0x3   :  { %15 = vsyncpa [#allocation4], 0 }
   0x4   :  { %16 = vsyncpa [#allocation13], 0  ;;  %s34_s23 = sshll.u32 %s508_s1, 4  ;;  %s35_s23 = int_to_ptr.hbm [resolvable:$true] %s34_s23 }
   0x5   :  { %17 = vsyncpa [#allocation5], 0  ;;  %s442_s24 = smov [#allocation6]   ;;  %s23_s28 = sshll.u32 %s507_s0, 4  ;;  %s24_s28 = int_to_ptr.hbm [resolvable:$true] %s23_s28 }
   0x6   :  { %s36_s25 = sshll.u32 %s442_s24, 4  ;;  %s443_s29 = smov [#allocation2]   ;;  %s37_s25 = int_to_ptr.vmem [resolvable:$true] %s36_s25 }
   0x7   :  { %39 = dma.hbm_to_vmem [thread:$0]  %s35_s23, 128, %s37_s25, [#allocation7]  }
   0x8   :  { %s25_s30 = sshll.u32 %s443_s29, 4  ;;  %s44_s9 = sshll.u32 %s509_s2, 4  ;;  %s26_s30 = int_to_ptr.vmem [resolvable:$true] %s25_s30  ;;  %s45_s9 = int_to_ptr.hbm [resolvable:$true] %s44_s9 }
   0x9   :  { %28 = dma.hbm_to_vmem [thread:$0]  %s24_s28, 128, %s26_s30, [#allocation3]  }
   0xa   :  { %s444_s1 = smov [#allocation8]   ;;  %s57_s13 = sshll.u32 %s510_s3, 4  ;;  %s58_s13 = int_to_ptr.hbm [resolvable:$true] %s57_s13 }
   0xb   :  { %s46_s10 = sshll.u32 %s444_s1, 4  ;;  %s445_s14 = smov 128   ;;  %s47_s10 = int_to_ptr.vmem [resolvable:$true] %s46_s10 }
   0xc   :  { %s446_s0 = smov 8   ;;  %s447_s15 = smov [#allocation9]  }
   0xd   :  { %52 = dma.hbm_to_vmem [thread:$0]  %s45_s9, 2048, %s47_s10, [#allocation7], %s445_s14, %s445_s14, %s446_s0  }
   0xe   :  { %s59_s16 = sshll.u32 %s447_s15, 4  ;;  %s60_s16 = int_to_ptr.vmem [resolvable:$true] %s59_s16 }
   0xf   :  { %65 = dma.hbm_to_vmem [thread:$0]  %s58_s13, 2048, %s60_s16, [#allocation10], %s445_s14, %s445_s14, %s446_s0  }
  0x10   :  { %430 = dma.done.wait [#allocation3], 128  }
  0x11   :  { %431 = vsyncadd [#allocation3], 4294967168 }
  0x12   :  { %432 = dma.done.wait [#allocation7], 2176  }
  0x13   :  { %433 = vsyncadd [#allocation7], 4294965120 }
  0x14   :  { %434 = dma.done.wait [#allocation10], 2048  }
  0x15   :  { %435 = vsyncadd [#allocation10], 4294965248  ;;  %v98_v0 = vld [vmem:[#allocation8 + $0x78] sm:$0xff]  ;;  %v97_v2 = vld [vmem:[#allocation8 + $0x70] sm:$0xff]  ;;  %vm181_vm0 = vcmask 64512   ;;  %vm195_vm1 = vcmask 7168  }
  0x16   :  { %v135_v1 = vld [vmem:[#allocation9 + $0x78] sm:$0xff]  ;;  %99 = vmatpush.msra.mxu0 %v98_v0  ;;  %v134_v3 = vld [vmem:[#allocation9 + $0x70] sm:$0xff]  ;;  %v96_v4 = vld [vmem:[#allocation8 + $0x68] sm:$0xff]  ;;  %s448_s2 = smov [#allocation11]   ;;  %s216_s19 = sshll.u32 %s511_s4, 4  ;;  %s217_s19 = int_to_ptr.hbm [resolvable:$true] %s216_s19 }
  0x17   :  { %136 = vmatpush.msra.mxu1 %v135_v1  ;;  %v133_v5 = vld [vmem:[#allocation9 + $0x68] sm:$0xff]  ;;  %v95_v6 = vld [vmem:[#allocation8 + $0x60] sm:$0xff]  ;;  %v94_v8 = vld [vmem:[#allocation8 + $0x58] sm:$0xff]  ;;  %s214_s3 = sshll.u32 %s448_s2, 4  ;;  %s449_s20 = smov [#allocation12]   ;;  %s215_s3 = int_to_ptr.vmem [resolvable:$true] %s214_s3 }
  0x18   :  { %100 = vmatpush.msra.mxu0 %v97_v2  ;;  %v132_v7 = vld [vmem:[#allocation9 + $0x60] sm:$0xff]  ;;  %v131_v9 = vld [vmem:[#allocation9 + $0x58] sm:$0xff]  ;;  %v93_v10 = vld [vmem:[#allocation8 + $0x50] sm:$0xff]  ;;  %s225_s21 = sshll.u32 %s449_s20, 4  ;;  %s227_s24 = sshll.u32 %s512_s5, 4  ;;  %s226_s21 = int_to_ptr.vmem [resolvable:$true] %s225_s21  ;;  %s228_s24 = int_to_ptr.hbm [resolvable:$true] %s227_s24 }
  0x19   :  { %137 = vmatpush.msra.mxu1 %v134_v3  ;;  %v130_v11 = vld [vmem:[#allocation9 + $0x50] sm:$0xff]  ;;  %v92_v12 = vld [vmem:[#allocation8 + $0x48] sm:$0xff]  ;;  %v91_v14 = vld [vmem:[#allocation8 + $0x40] sm:$0xff]  ;;  %s236_s26 = sshll.u32 %s513_s6, 4  ;;  %s450_s5 = smov [#allocation14]   ;;  %s237_s26 = int_to_ptr.hbm [resolvable:$true] %s236_s26 }
  0x1a   :  { %101 = vmatpush.msra.mxu0 %v96_v4  ;;  %v129_v13 = vld [vmem:[#allocation9 + $0x48] sm:$0xff]  ;;  %v128_v15 = vld [vmem:[#allocation9 + $0x40] sm:$0xff]  ;;  %v90_v16 = vld [vmem:[#allocation8 + $0x38] sm:$0xff] }
  0x1b   :  { %138 = vmatpush.msra.mxu1 %v133_v5  ;;  %v127_v17 = vld [vmem:[#allocation9 + $0x38] sm:$0xff]  ;;  %v89_v18 = vld [vmem:[#allocation8 + $0x30] sm:$0xff]  ;;  %v88_v20 = vld [vmem:[#allocation8 + $0x28] sm:$0xff] }
  0x1c   :  { %102 = vmatpush.msra.mxu0 %v95_v6  ;;  %v126_v19 = vld [vmem:[#allocation9 + $0x30] sm:$0xff]  ;;  %v125_v21 = vld [vmem:[#allocation9 + $0x28] sm:$0xff]  ;;  %v87_v22 = vld [vmem:[#allocation8 + $0x20] sm:$0xff] }
  0x1d   :  { %139 = vmatpush.msra.mxu1 %v132_v7  ;;  %v124_v23 = vld [vmem:[#allocation9 + $0x20] sm:$0xff]  ;;  %v86_v24 = vld [vmem:[#allocation8 + $0x18] sm:$0xff]  ;;  %v85_v26 = vld [vmem:[#allocation8 + $0x10] sm:$0xff] }
  0x1e   :  { %103 = vmatpush.msra.mxu0 %v94_v8  ;;  %v123_v25 = vld [vmem:[#allocation9 + $0x18] sm:$0xff]  ;;  %v122_v27 = vld [vmem:[#allocation9 + $0x10] sm:$0xff]  ;;  %v84_v28 = vld [vmem:[#allocation8 + $0x8] sm:$0xff] }
  0x1f   :  { %140 = vmatpush.msra.mxu1 %v131_v9  ;;  %v121_v29 = vld [vmem:[#allocation9 + $0x8] sm:$0xff]  ;;  %v83_v30 = vld [vmem:[#allocation8] sm:$0xff]  ;;  %v82_v32 = vld [vmem:[#allocation2] sm:$0xff] }
  0x20   :  { %104 = vmatpush.msra.mxu0 %v93_v10  ;;  %v120_v31 = vld [vmem:[#allocation9] sm:$0xff]  ;;  %v119_v33 = vld [vmem:[#allocation6] sm:$0xff] }
  0x21   :  { %141 = vmatpush.msra.mxu1 %v130_v11 }
  0x22   :  { %105 = vmatpush.msra.mxu0 %v92_v12 }
  0x23   :  { %142 = vmatpush.msra.mxu1 %v129_v13 }
  0x24   :  { %106 = vmatpush.msra.mxu0 %v91_v14 }
  0x25   :  { %143 = vmatpush.msra.mxu1 %v128_v15 }
  0x26   :  { %107 = vmatpush.msra.mxu0 %v90_v16 }
  0x27   :  { %144 = vmatpush.msra.mxu1 %v127_v17 }
  0x28   :  { %108 = vmatpush.msra.mxu0 %v89_v18 }
  0x29   :  { %145 = vmatpush.msra.mxu1 %v126_v19 }
  0x2a   :  { %109 = vmatpush.msra.mxu0 %v88_v20 }
  0x2b   :  { %146 = vmatpush.msra.mxu1 %v125_v21 }
  0x2c   :  { %110 = vmatpush.msra.mxu0 %v87_v22 }
  0x2d   :  { %147 = vmatpush.msra.mxu1 %v124_v23 }
  0x2e   :  { %111 = vmatpush.msra.mxu0 %v86_v24 }
  0x2f   :  { %148 = vmatpush.msra.mxu1 %v123_v25 }
  0x30   :  { %112 = vmatpush.msra.mxu0 %v85_v26 }
  0x31   :  { %149 = vmatpush.msra.mxu1 %v122_v27 }
  0x32   :  { %113 = vmatpush.msra.mxu0 %v84_v28 }
  0x33   :  { %150 = vmatpush.msra.mxu1 %v121_v29 }
  0x34   :  { %114 = vmatpush.msra.mxu0 %v83_v30 }
  0x35   :  { %151 = vmatpush.msra.mxu1 %v120_v31  ;;  %115 = vmatmul.f32.vlgmr.msra.gmra.mxu0 %v82_v32 }
  0x36   :  { %152 = vmatmul.f32.vlgmr.msra.gmra.mxu1 %v119_v33 }
  0xb2   :  { %v116_v34 = vpop.f32.mrf.mxu0 }
  0xb3   :  { %v153_v35 = vpop.f32.mrf.mxu1  ;;  %156 = vst [vmem:[#allocation11] sm:$0xff] %v116_v34  ;;  %173 = vmatpush.xpose.msra.mxu2 %v116_v34 }
  0xb4   :  { %v178_v36 = vmul.f32 %v153_v35, %v116_v34  ;;  %157 = vst [vmem:[#allocation12] sm:$0xff] %v153_v35  ;;  %219 = dma.vmem_to_hbm [thread:$0]  %s215_s3, 128, %s217_s19, [#allocation4]  }
  0xb5   :  { %230 = dma.vmem_to_hbm [thread:$0]  %s226_s21, 128, %s228_s24, [#allocation13]  }
  0xb6   :  { %179 = vadd.xlane.f32.xlu1 %v178_v36  ;;  %174 = vmatmul.f32.vlgmr.msra.gmra.mxu2 %v153_v35 }
 0x129   :  { %v180_v48 = vpop.xlane.xlu1 %179 }
 0x139   :  { %v175_v37 = vpop.f32.mrf.mxu2 }
 0x13a   :  { %v182_v38 = vsel %vm181_vm0, %v175_v37, -inf }
 0x13b   :  { %183 = vmax.xlane.f32.xlu0 %v182_v38 }
 0x1ae   :  { %v184_v39 = vpop.xlane.xlu0 %183 }
 0x1af   :  { %v185_v40 = vsub.f32 %v175_v37, %v184_v39 }
 0x1b1   :  { %v186_v41 = vmul.f32 1.442695, %v185_v40 }
 0x1b3   :  { %270 = vpow2.f32 %v186_v41 }
 0x1b9   :  { %v271_v42 = vpop.eup %270 }
 0x1ba   :  { %v188_v43 = vsel %vm181_vm0, %v271_v42, 0.0 }
 0x1bb   :  { %189 = vadd.xlane.f32.xlu0 %v188_v43 }
 0x22e   :  { %v190_v44 = vpop.xlane.xlu0 %189 }
 0x22f   :  { %272 = vlog2.f32 %v190_v44 }
 0x235   :  { %v273_v45 = vpop.eup %272 }
 0x236   :  { %v192_v46 = vmul.f32 0.6931472, %v273_v45 }
 0x238   :  { %v193_v47 = vadd.f32 %v192_v46, %v184_v39 }
 0x23a   :  { %v194_v49 = vsub.f32 %v193_v47, %v180_v48 }
 0x23c   :  { %v196_v50 = vsel %vm195_vm1, %v194_v49, 0.0 }
 0x23d   :  { %197 = vadd.xlane.f32.xlu1 %v196_v50 }
 0x2b0   :  { %v198_v51 = vpop.xlane.xlu1 %197 }
 0x2b1   :  { %v199_v52 = vrot.slane %v198_v51, 4 }
 0x2b3   :  { %v200_v53 = vadd.f32 %v199_v52, %v198_v51 }
 0x2b5   :  { %v201_v54 = vrot.slane %v200_v53, 2 }
 0x2b7   :  { %v202_v55 = vadd.f32 %v201_v54, %v200_v53 }
 0x2b9   :  { %v203_v56 = vrot.slane %v202_v55, 1 }
 0x2bb   :  { %v204_v57 = vadd.f32 %v203_v56, %v202_v55 }
 0x2bd   :  { %259 = vpush %v204_v57 }
 0x2ee   :  { %s260_s27 = spop %259 }
 0x2ef   :  { %s206_s28 = smul.f32 0.125, %s260_s27 }
 0x2f1   :  { %208 = sst [smem:[#allocation14]] %s206_s28 }
 0x2f2   :  { %239 = dma.smem_to_hbm %s450_s5, 16, %s237_s26, [#allocation5]  }
 0x2f3   :  { %436 = dma.done.wait [#allocation4], 128  }
 0x2f4   :  { %437 = vsyncadd [#allocation4], 4294967168 }
 0x2f5   :  { %438 = dma.done.wait [#allocation13], 128  }
 0x2f6   :  { %439 = vsyncadd [#allocation13], 4294967168 }
 0x2f7   :  { %440 = dma.done.wait [#allocation5], 16  }
 0x2f8   :  { %441 = vsyncadd [#allocation5], 4294967280 }
 0x2f9   :  { %252 = sfence }
 0x2fa   :  { %253 = vsyncpa [#allocation3], 1 }
 0x2fb   :  { %254 = vsyncpa [#allocation7], 1 }
 0x2fc   :  { %255 = vsyncpa [#allocation10], 1 }
 0x2fd   :  { %256 = vsyncpa [#allocation4], 1 }
 0x2fe   :  { %257 = vsyncpa [#allocation13], 1 }
 0x2ff   :  { %258 = vsyncpa [#allocation5], 1 }

</bundles_post_ra>
